<compile_context>
chip_gen: v7x
topology: tpu7x:2x2x1
jax: 0.10.0
libtpu: 0.0.40
codegen_flags: <defaults>
</compile_context>

<pallas_src>
import jax
import jax.numpy as jnp
from jax.experimental import pallas as pl
from jax.experimental.pallas import tpu as pltpu


def _cossim_kernel(v1_ref, v2_ref, label_ref, pred_ref, psum_ref):
    v1 = v1_ref[...].astype(jnp.float32)          # (tb, D)
    v2 = v2_ref[...].astype(jnp.float32)          # (tb, D)
    lab = label_ref[...].astype(jnp.float32)      # (tb, 1)

    dot = jnp.sum(v1 * v2, axis=1, keepdims=True)                   # (tb, 1)
    n1 = jnp.sqrt(jnp.sum(jnp.square(v1), axis=1, keepdims=True))   # (tb, 1)
    n2 = jnp.sqrt(jnp.sum(jnp.square(v2), axis=1, keepdims=True))   # (tb, 1)

    # Exact divide: approx reciprocal could flip the 1e-5 rtol loss check.
    cos = dot / (n1 * n2 + 1e-6)                                     # (tb, 1)

    # NOTE: torch produces int64 here; the TPU kernel emits int32.
    pred_ref[...] = jnp.where(cos >= 0.0, jnp.int32(1), jnp.int32(-1))

    # One partial sum per tile, broadcast into a full lane-dense (1,8,128)
    # block (unmasked stores, tiny writeback).  Wrapper reads [i, 0, 0].
    s = jnp.sum(jnp.square(cos - lab))
    psum_ref[...] = jnp.full(psum_ref.shape, s, dtype=psum_ref.dtype)


def _physical_vmem_bytes():
    try:
        return int(pltpu.get_tpu_info().vmem_capacity_bytes)
    except Exception:
        return 64 * 1024 * 1024  # conservative default (v7x per-TensorCore)


def _target_block_bytes():
    """Generation-aware target bytes per input block (per pipeline buffer)."""
    kind = ""
    try:
        kind = jax.devices()[0].device_kind.lower()
    except Exception:
        pass
    if "7" in kind:                 # v7x: ~3.2 TB/s HBM -> bigger blocks
        return 6 * 1024 * 1024
    return 2 * 1024 * 1024          # v5e/v6e: 1-2 MB already amortizes overhead


def _choose_tb(B, D, in_dtype, *, target_block_bytes, vmem_budget_bytes):
    """Batch tile: byte-targeted, VMEM-modelled (incl. lane padding of the
    narrow (tb,1) buffers), aligned to 8/16 rows, dividing B, >= 4 grid steps
    when B permits."""
    itemsize = jnp.dtype(in_dtype).itemsize
    sub = 16 if itemsize == 2 else (32 if itemsize == 1 else 8)

    # Per-row VMEM model:
    #   2 inputs x 2 pipeline buffers (native dtype)
    # + ~3 live f32 (tb, D) temporaries (upcasts / products)
    # + label + pred (tb,1) buffers lane-padded to (tb,128), x2 buffers each
    per_row = (2 * 2 * D * itemsize) + (3 * 4 * D) + (2 * 2 * 128 * 4)

    tb = min(B,
             max(sub, vmem_budget_bytes // per_row),
             max(sub, target_block_bytes // max(1, D * itemsize)))

    # Keep >= 4 grid steps (>= 2 per TensorCore on v7x) when B is big enough,
    # so software pipelining and the megacore split actually engage.
    if B >= 4 * sub:
        tb = min(tb, B // 4)
    elif B >= 2 * sub:
        tb = min(tb, B // 2)

    if tb >= B:
        return B
    for align in (sub, 8):
        cand = (tb // align) * align
        while cand >= align:
            if B % cand == 0:
                return cand
            cand -= align
    return B  # last resort: one full-array tile (always a legal block shape)


def _plan_vmem_limit_bytes(D, tb, in_dtype):
    """Scoped VMEM limit sized from the actual buffer plan + 25% headroom."""
    itemsize = jnp.dtype(in_dtype).itemsize
    block_in = tb * D * itemsize
    narrow = tb * 128 * 4            # (tb,1) padded to (tb,128), f32/int32
    temps = 3 * tb * D * 4           # live f32 temporaries
    psum_out = 8 * 128 * 4
    plan = (2 * 2 * block_in         # v1, v2, double-buffered
            + 2 * 2 * narrow         # label (in) + pred (out), double-buffered
            + 2 * psum_out           # partial-sum output, double-buffered
            + temps)
    limit = int(plan * 1.25) + (2 << 20)
    phys = _physical_vmem_bytes()
    return int(max(4 << 20, min(limit, (phys * 9) // 10)))


def cossim_loss(vector_feature1, vector_feature2, label, *, tb=None):
    """Pallas implementation of CosSimLoss.forward.

    vector_feature1, vector_feature2: (B, D) float (f32 or bf16)
    label: (B,) float
    Returns (prediction: (B,) int32, loss: scalar float32)
    """
    B, D = vector_feature1.shape
    assert vector_feature2.shape == (B, D)
    assert label.shape == (B,)

    in_dtype = vector_feature1.dtype
    itemsize = jnp.dtype(in_dtype).itemsize

    if tb is None:
        phys = _physical_vmem_bytes()
        budget = min((phys * 7) // 10, 64 * 1024 * 1024)
        tb = _choose_tb(B, D, in_dtype,
                        target_block_bytes=_target_block_bytes(),
                        vmem_budget_bytes=budget)
    assert B % tb == 0 and (tb == B or tb % 8 == 0), (B, tb)
    num_tiles = B // tb

    vmem_limit = _plan_vmem_limit_bytes(D, tb, in_dtype)

    label2d = label.reshape(B, 1)

    cost = pl.CostEstimate(
        flops=int(6 * B * D + 8 * B),
        transcendentals=int(2 * B),
        bytes_accessed=int(2 * B * D * itemsize + 8 * B
                           + num_tiles * 8 * 128 * 4),
    )

    pred2d, psum = pl.pallas_call(
        _cossim_kernel,
        out_shape=(
            jax.ShapeDtypeStruct((B, 1), jnp.int32),              # prediction
            jax.ShapeDtypeStruct((num_tiles, 8, 128), jnp.float32),  # partial sums
        ),
        grid_spec=pltpu.PrefetchScalarGridSpec(
            num_scalar_prefetch=0,
            grid=(num_tiles,),
            in_specs=[
                pl.BlockSpec((tb, D), lambda i: (i, 0)),   # v1 tile
                pl.BlockSpec((tb, D), lambda i: (i, 0)),   # v2 tile
                pl.BlockSpec((tb, 1), lambda i: (i, 0)),   # label tile
            ],
            out_specs=[
                pl.BlockSpec((tb, 1), lambda i: (i, 0)),        # prediction tile
                pl.BlockSpec((1, 8, 128), lambda i: (i, 0, 0)),  # partial-sum blk
            ],
        ),
        compiler_params=pltpu.CompilerParams(
            # No cross-tile state -> batch axis shards across TCs on v7x.
            dimension_semantics=("parallel",),
            vmem_limit_bytes=int(vmem_limit),
        ),
        cost_estimate=cost,
    )(vector_feature1, vector_feature2, label2d)

    prediction = pred2d.reshape(B)
    # Exact mean: all tiles are equal-sized (B % tb == 0 enforced above).
    loss = jnp.sum(psum[:, 0, 0]) / B
    return prediction, loss


def _reference(v1, v2, label):
    dot = jnp.sum(v1 * v2, axis=1)
    cos = dot / (jnp.linalg.norm(v1, axis=1) * jnp.linalg.norm(v2, axis=1) + 1e-6)
    loss = jnp.mean((cos - label) ** 2.0)
    pred = jnp.where(cos >= 0, 1, -1)
    return pred, loss


if __name__ == "__main__":
    key = jax.random.PRNGKey(0)
    k1, k2, k3 = jax.random.split(key, 3)

    B, D = 16, 32
    v1 = jax.random.normal(k1, (B, D), dtype=jnp.float32)
    v2 = jax.random.normal(k2, (B, D), dtype=jnp.float32)
    # labels in {-1, +1} like a cosine-similarity target
    label = jnp.where(jax.random.bernoulli(k3, 0.5, (B,)), 1.0, -1.0).astype(jnp.float32)

    pred, loss = cossim_loss(v1, v2, label)
    jax.block_until_ready((pred, loss))

    ref_pred, ref_loss = _reference(v1, v2, label)
    assert jnp.array_equal(pred, ref_pred.astype(jnp.int32)), (pred, ref_pred)
    assert jnp.allclose(loss, ref_loss, rtol=1e-5, atol=1e-6), (loss, ref_loss)

    print("KERNEL_OK")
</pallas_src>

<mosaic_0001>
module attributes {stable_mosaic.version = 11 : i64} {
  func.func @_cossim_kernel(%arg0: i32, %arg1: memref<8x32xf32, #tpu.memory_space<vmem>>, %arg2: memref<8x32xf32, #tpu.memory_space<vmem>>, %arg3: memref<8x1xf32, #tpu.memory_space<vmem>>, %arg4: memref<8x1xi32, #tpu.memory_space<vmem>>, %arg5: memref<1x8x128xf32, #tpu.memory_space<vmem>>) attributes {dimension_semantics = [#tpu.dimension_semantics<parallel>], iteration_bounds = array<i64: 2>, scalar_prefetch = 0 : i64, scratch_operands = 0 : i64, tpu.core_type = #tpu.core_type<tc>, window_params = [{transform_indices = @transform_0, window_bounds = array<i64: 8, 32>}, {transform_indices = @transform_1, window_bounds = array<i64: 8, 32>}, {transform_indices = @transform_2, window_bounds = array<i64: 8, 1>}, {transform_indices = @transform_3, window_bounds = array<i64: 8, 1>}, {transform_indices = @transform_4, window_bounds = array<i64: 1, 8, 128>}]} {
    %c0 = arith.constant 0 : index
    %c0_0 = arith.constant 0 : index
    %0 = vector.load %arg1[%c0, %c0_0] : memref<8x32xf32, #tpu.memory_space<vmem>>, vector<8x32xf32>
    %c0_1 = arith.constant 0 : index
    %c0_2 = arith.constant 0 : index
    %1 = vector.load %arg2[%c0_1, %c0_2] : memref<8x32xf32, #tpu.memory_space<vmem>>, vector<8x32xf32>
    %c0_3 = arith.constant 0 : index
    %c0_4 = arith.constant 0 : index
    %2 = vector.load %arg3[%c0_3, %c0_4] : memref<8x1xf32, #tpu.memory_space<vmem>>, vector<8x1xf32>
    %3 = arith.mulf %0, %1 : vector<8x32xf32>
    %cst = arith.constant dense<0.000000e+00> : vector<8xf32>
    %4 = vector.multi_reduction <add>, %3, %cst [1] : vector<8x32xf32> to vector<8xf32>
    %5 = vector.shape_cast %4 : vector<8xf32> to vector<8x1xf32>
    %6 = arith.mulf %0, %0 : vector<8x32xf32>
    %cst_5 = arith.constant dense<0.000000e+00> : vector<8xf32>
    %7 = vector.multi_reduction <add>, %6, %cst_5 [1] : vector<8x32xf32> to vector<8xf32>
    %8 = vector.shape_cast %7 : vector<8xf32> to vector<8x1xf32>
    %9 = math.sqrt %8 : vector<8x1xf32>
    %10 = arith.mulf %1, %1 : vector<8x32xf32>
    %cst_6 = arith.constant dense<0.000000e+00> : vector<8xf32>
    %11 = vector.multi_reduction <add>, %10, %cst_6 [1] : vector<8x32xf32> to vector<8xf32>
    %12 = vector.shape_cast %11 : vector<8xf32> to vector<8x1xf32>
    %13 = math.sqrt %12 : vector<8x1xf32>
    %14 = arith.mulf %9, %13 : vector<8x1xf32>
    %cst_7 = arith.constant 9.99999997E-7 : f32
    %15 = vector.broadcast %cst_7 : f32 to vector<8x1xf32>
    %16 = arith.addf %14, %15 : vector<8x1xf32>
    %17 = arith.divf %5, %16 : vector<8x1xf32>
    %cst_8 = arith.constant 0.000000e+00 : f32
    %18 = vector.broadcast %cst_8 : f32 to vector<8x1xf32>
    %19 = arith.cmpf oge, %17, %18 : vector<8x1xf32>
    %c1_i32 = arith.constant 1 : i32
    %c-1_i32 = arith.constant -1 : i32
    %20 = vector.broadcast %c1_i32 : i32 to vector<8x1xi32>
    %21 = vector.broadcast %c-1_i32 : i32 to vector<8x1xi32>
    %22 = arith.select %19, %20, %21 : vector<8x1xi1>, vector<8x1xi32>
    %c0_9 = arith.constant 0 : index
    %c0_10 = arith.constant 0 : index
    %23 = vector.load %arg4[%c0_9, %c0_10] : memref<8x1xi32, #tpu.memory_space<vmem>>, vector<8x1xi32>
    tpu.vector_store %arg4[%c0_9, %c0_10], %22 {strides = array<i32>} : memref<8x1xi32, #tpu.memory_space<vmem>>, vector<8x1xi32>,
    %24 = arith.subf %17, %2 : vector<8x1xf32>
    %25 = arith.mulf %24, %24 : vector<8x1xf32>
    %26 = vector.shape_cast %25 : vector<8x1xf32> to vector<1x8x1xf32>
    %cst_11 = arith.constant dense<0.000000e+00> : vector<1xf32>
    %27 = vector.multi_reduction <add>, %26, %cst_11 [1, 2] : vector<1x8x1xf32> to vector<1xf32>
    %28 = vector.shape_cast %27 : vector<1xf32> to vector<1x1x1xf32>
    %29 = vector.extract %28[0, 0, 0] : f32 from vector<1x1x1xf32>
    %30 = vector.broadcast %29 : f32 to vector<1x8x128xf32>
    %c0_12 = arith.constant 0 : index
    %c0_13 = arith.constant 0 : index
    %c0_14 = arith.constant 0 : index
    %31 = vector.load %arg5[%c0_12, %c0_13, %c0_14] : memref<1x8x128xf32, #tpu.memory_space<vmem>>, vector<1x8x128xf32>
    tpu.vector_store %arg5[%c0_12, %c0_13, %c0_14], %30 {strides = array<i32>} : memref<1x8x128xf32, #tpu.memory_space<vmem>>, vector<1x8x128xf32>,
    return
  }
  func.func @transform_0(%arg0: i32) -> (i32, i32) {
    %c0_i32 = arith.constant 0 : i32
    %c0_i32_0 = arith.constant 0 : i32
    return %arg0, %c0_i32 : i32, i32
  }
  func.func @transform_1(%arg0: i32) -> (i32, i32) {
    %c0_i32 = arith.constant 0 : i32
    %c0_i32_0 = arith.constant 0 : i32
    return %arg0, %c0_i32 : i32, i32
  }
  func.func @transform_2(%arg0: i32) -> (i32, i32) {
    %c0_i32 = arith.constant 0 : i32
    %c0_i32_0 = arith.constant 0 : i32
    return %arg0, %c0_i32 : i32, i32
  }
  func.func @transform_3(%arg0: i32) -> (i32, i32) {
    %c0_i32 = arith.constant 0 : i32
    %c0_i32_0 = arith.constant 0 : i32
    return %arg0, %c0_i32 : i32, i32
  }
  func.func @transform_4(%arg0: i32) -> (i32, i32, i32) {
    %c0_i32 = arith.constant 0 : i32
    %c0_i32_0 = arith.constant 0 : i32
    %c0_i32_1 = arith.constant 0 : i32
    return %arg0, %c0_i32, %c0_i32_0 : i32, i32, i32
  }
}

</mosaic_0001>

<bundles_post_ra>
// kernel: tpu_custom_call.1
= control target key start
LH: loop header
LB: loop body
LE: loop exit
PB: predicated region body
PF: predicated region fallthrough
CT: control target
= control target key end

     0   :  { %10 = vsyncpa [#allocation3], 0  ;;  %s826_s0 = inlined_call_operand.vmem [shape: f32[16,32], index: 0, kind: input, shape index: {}]   ;;  %s827_s1 = inlined_call_operand.hbm [shape: f32[16,32], index: 1, kind: input, shape index: {}]   ;;  %s828_s2 = inlined_call_operand.vmem [shape: f32[16,1], index: 2, kind: input, shape index: {}]   ;;  %s829_s3 = inlined_call_operand.vmem [shape: s32[16,1], index: 3, kind: output, shape index: {0}]   ;;  %s830_s4 = inlined_call_operand.hbm [shape: f32[2,8,128], index: 4, kind: output, shape index: {1}]  }
   0x1   :  { %12 = vsyncpa [#allocation3 + $0x1], 0 }
   0x2   :  { %13 = vsyncpa [#allocation4], 0 }
   0x3   :  { %15 = vsyncpa [#allocation4 + $0x1], 0  ;;  %s645_s15 = smov 0   ;;  %s647_s16 = smov 0  }
   0x4   :  { %s649_s17 = smov 0   ;;  %s651_s18 = smov 0  }
   0x5 LB: > { %s666_s19 = sadd.s32 4294967295, %s615_s18   ;;  %s449_s20 = sadd.s32 4294967294, %s615_s18   ;;  %s615_s18 = sphi %s651_s18, %s845_s18   ;;  %s611_s17 = sphi %s649_s17, %s844_s17   ;;  %s607_s16 = sphi %s647_s16, %s843_s16   ;;  %s603_s15 = sphi %s645_s15, %s842_s15  }
   0x6   : > { %s670_s21 = sadd.s32 1, %s615_s18   ;;  %s54_s22 = sadd.s32 1, %s611_s17 }
   0x7   : > { %s51_s23 = ssub.s32 %s615_s18, %s670_s21  ;;  %p61_p0 = scmp.ne.s32.totalorder %s611_s17, %s607_s16 }
   0x8   : > { %p52_p1 = scmp.eq.s32.totalorder %s51_s23, 0  ;;  %p62_p2 = scmp.eq.s32.totalorder %s615_s18, 0 }
   0x9   : > { %p67_p3 = scmp.ne.s32.totalorder %s607_s16, %s603_s15  ;;  %p68_p4 = scmp.eq.s32.totalorder %s666_s19, 0 }
   0xa   : > { %s682_s24 = scalar_select %p52_p1, %s611_s17, %s54_s22  }
   0xb   : > { %p684_p5 = por %p62_p2, %p61_p0  ;;  %p688_p6 = por %p68_p4, %p67_p3 }
   0xc   : > { %p143_p7 = scmp.eq.s32.totalorder %s666_s19, 1  ;;  %p149_p8 = scmp.eq.s32.totalorder %s449_s20, 1 }
   0xd   : > { %p478_p10 = scmp.lt.s32.totalorder %s615_s18, 2  ;;  %s176_s29 = sand.u32 1, %s611_s17  }
   0xe   : > { %p695_p11 = por %p143_p7, %p61_p0  ;;  %p699_p12 = por %p149_p8, %p67_p3 }
   0xf   : > { %s453_s30 = sshll.u32 %s615_s18, 7  ;;  %s452_s5 = sshll.u32 %s176_s29, 3 }
  0x10   : > { %s834_s27 = scalar_select %p695_p11, 1, 0 }
  0x11   : > { %s835_s28 = scalar_select %p699_p12, 1, 0 }
  0x12   : > { %s708_s8 = scalar_lea.hbm %s827_s1, %s453_s30  ;;  %s180_s9 = scalar_lea.vmem [#allocation2], %s452_s5 }
  0x13   : > { %s187_s10 = sshll.u32 %s180_s9, 4  ;;  %p712_p13 = pnand %p478_p10, %p684_p5  ;;  %s716_s10 = int_to_ptr.vmem [resolvable:$true] %s187_s10 }
  0x14   : > { %s177_s12 = scalar_lea.sflag [#allocation3], %s176_s29  ;;  %s519_s13 = scalar_lea.hbm %s708_s8, 128 }
  0x15   : > { %p520_p2 = scmp.ne.s32.totalorder %s708_s8, %s519_s13  ;;  %p521_p3 = pneg %p712_p13 }
  0x16   : > { %s524_s22 = scalar_lea.hbm %s827_s1, 256  ;;  %p525_p5 = scmp.lt.u32.totalorder %s708_s8, %s827_s1 }
  0x17   : > { %p522_p4 = pnand %p521_p3, %p520_p2  ;;  %p526_p8 = scmp.lt.u32.totalorder %s524_s22, %s519_s13 }
  0x18   : > { %p528_p9 = scmp.lt.u32.totalorder %s519_s13, %s708_s8 }
  0x19   : > { %p523_p7 = pneg %p522_p4  ;;  %p527_p10 = por %p526_p8, %p525_p5 }
  0x1b   : > { %p529_p0 = por %p528_p9, %p527_p10 }
  0x1d   : > { %p530_p1 = pnand %p529_p0, %p523_p7 }
  0x1f   : > { %533 = shalt.err (!%p530_p1)
}
  0x20   : > { %s534_s29 = scalar_lea.vmem %s716_s10, 128  ;;  %s617_s30 = smov [#allocation2]  }
  0x21   : > { %p535_p2 = scmp.ne.s32.totalorder %s716_s10, %s534_s29  ;;  %s539_s5 = sshll.u32 %s617_s30, 4  ;;  %s540_s5 = int_to_ptr.vmem [resolvable:$false] %s539_s5 }
  0x22   : > { %s541_s6 = scalar_lea.vmem %s540_s5, 256  ;;  %p542_p11 = scmp.lt.s32.totalorder %s716_s10, %s540_s5 }
  0x23   : > { %p537_p4 = pnand %p535_p2, %p521_p3  ;;  %p543_p5 = scmp.lt.s32.totalorder %s541_s6, %s534_s29 }
  0x25   : > { %p538_p12 = pneg %p537_p4  ;;  %p544_p8 = por %p543_p5, %p542_p11 }
  0x27   : > { %p545_p9 = pnand %p544_p8, %p538_p12 }
  0x29   : > { %548 = shalt.err (!%p545_p9)
}
  0x2a   : > { %473 = dma.hbm_to_vmem [thread:$0]  (!%p712_p13), %s708_s8, 128, %s716_s10, %s177_s12  }
  0x2b   : > { %p837_p0 = scmp.lt.s32.totalorder %s615_s18, 3  ;;  %p838_p1 = scmp.ge.s32.totalorder %s615_s18, 1 }
  0x2d   : > { %p200_p3 = pnand %p838_p1, %p837_p0 }
  0x2e   : > { %s750_s7 = sand.u32 (!%p200_p3), 1, %s607_s16  }
  0x2f   : > { %203 = sbr.rel (%p200_p3) target bundleno = 467 (0x1d3), region = 32  ;;  %s455_s9 = sshll.u32 (!%p200_p3), %s750_s7, 3 }
  0x30   : > { %s206_s13 = scalar_lea.sflag (!%p200_p3), [#allocation3], %s750_s7  ;;  %s209_s11 = scalar_lea.vmem (!%p200_p3), [#allocation2], %s455_s9 }
  0x36   : > { %594 = dma.done.wait (%p688_p6), %s206_s13, 128  }
  0x37   : > { %596 = vsyncadd (%p688_p6), %s206_s13, 4294967168  ;;  %p246_p11 = scmp.lt.s32.totalorder %s666_s19, 1  ;;  %vm262_vm0 = vcmask 261120   ;;  %v259_v1 = vld [vmem:[%s209_s11] sm:$0xff]  ;;  %vm294_vm5 = vcmask 7168   ;;  %v618_v27 = vmov 4294967295  }
  0x38   : > { %v277_v3 = vmul.f32 %v259_v1, %v259_v1  ;;  %s245_s5 = scalar_lea.vmem [#allocation5], %s455_s9  ;;  %s461_s13 = sshll.u32 %s666_s19, 7 }
  0x39   : > { %s247_s8 = scalar_select %p246_p11, %s666_s19, 1 }
  0x3a   : > { %v278_v7 = vsel %vm262_vm0, %v277_v3, 0.0  ;;  %s331_s6 = sshll.u32 %s245_s5, 4  ;;  %s784_s12 = scalar_lea.hbm %s830_s4, %s461_s13  ;;  %s779_s6 = int_to_ptr.vmem [resolvable:$true] %s331_s6 }
  0x3b   : > { %s762_s10 = sshll.u32 %s247_s8, 3  ;;  %s315_s14 = scalar_lea.sflag [#allocation4], %s750_s7 }
  0x3c   : > { %s249_s20 = scalar_lea.vmem %s826_s0, %s762_s10  ;;  %s253_s23 = scalar_lea.vmem %s828_s2, %s762_s10 }
  0x3d   : > { %v258_v0 = vld [vmem:[%s249_s20] sm:$0xff]  ;;  %s257_s30 = scalar_lea.vmem %s829_s3, %s762_s10  ;;  %s549_s20 = scalar_lea.vmem %s779_s6, 128 }
  0x3e   : > { %v266_v2 = vmul.f32 %v258_v0, %v258_v0  ;;  %v261_v4 = vmul.f32 %v259_v1, %v258_v0  ;;  %v260_v24 = vld [vmem:[%s253_s23] sm:$0xff]  ;;  %p550_p6 = scmp.ne.s32.totalorder %s779_s6, %s549_s20  ;;  %p839_p12 = scmp.ne.s32.totalorder %s834_s27, 0 }
  0x3f   : > { %s619_s19 = smov [#allocation5]  }
  0x40   : > { %v267_v5 = vsel %vm262_vm0, %v266_v2, 0.0  ;;  %v263_v6 = vsel %vm262_vm0, %v261_v4, 0.0  ;;  %p551_p13 = pnand %p550_p6, %p839_p12  ;;  %s553_s9 = sshll.u32 %s619_s19, 4  ;;  %s554_s9 = int_to_ptr.vmem [resolvable:$false] %s553_s9 }
  0x41   : > { %268 = vadd.xlane.f32.xlu0 %v267_v5  ;;  %264 = vadd.xlane.f32.xlu1 %v263_v6  ;;  %s555_s26 = scalar_lea.vmem %s554_s9, 256  ;;  %p556_p10 = scmp.lt.s32.totalorder %s779_s6, %s554_s9 }
  0x42   : > { %p552_p7 = pneg %p551_p13  ;;  %p557_p2 = scmp.lt.s32.totalorder %s555_s26, %s549_s20 }
  0x44   : > { %p558_p4 = por %p557_p2, %p556_p10 }
  0x45   : > { %279 = vadd.xlane.f32.xlu0 %v278_v7 }
  0x46   : > { %p559_p5 = pnand %p558_p4, %p552_p7 }
  0xce   : > { %v269_v8 = vpop.xlane.xlu0 %268  ;;  %v265_v22 = vpop.xlane.xlu1 %264 }
  0xcf   : > { %513 = vrsqrt.f32 %v269_v8  ;;  %vm272_vm1 = vcmp.eq.f32.partialorder %v269_v8, inf  ;;  %v275_v15 = vand.u32 2147483648, %v269_v8  ;;  %vm274_vm3 = vcmp.eq.f32.partialorder %v269_v8, 0.0 }
  0xd2   : > { %v280_v9 = vpop.xlane.xlu0 %279 }
  0xd3   : > { %515 = vrsqrt.f32 %v280_v9  ;;  %vm283_vm2 = vcmp.eq.f32.partialorder %v280_v9, inf  ;;  %v286_v16 = vand.u32 2147483648, %v280_v9  ;;  %vm285_vm4 = vcmp.eq.f32.partialorder %v280_v9, 0.0 }
  0xd9   : > { %v514_v10 = vpop.eup %513 }
  0xda   : > { %v271_v11 = vmul.f32 %v514_v10, %v269_v8 }
  0xdc   : > { %v273_v13 = vsel %vm272_vm1, %v269_v8, %v271_v11 }
  0xdd   : > { %v516_v12 = vpop.eup %515  ;;  %v276_v18 = vsel %vm274_vm3, %v275_v15, %v273_v13 }
  0xde   : > { %v282_v14 = vmul.f32 %v516_v12, %v280_v9 }
  0xe0   : > { %v284_v17 = vsel %vm283_vm2, %v280_v9, %v282_v14 }
  0xe1   : > { %v287_v19 = vsel %vm285_vm4, %v286_v16, %v284_v17 }
  0xe2   : > { %v288_v20 = vmul.f32 %v287_v19, %v276_v18 }
  0xe4   : > { %v289_v21 = vadd.f32 1e-06, %v288_v20 }
  0xe6   : > { %517 = vrcp.f32 %v289_v21 }
  0xf0   : > { %v518_v23 = vpop.eup %517 }
  0xf1   : > { %v291_v25 = vmul.f32 %v518_v23, %v265_v22 }
  0xf3   : > { %vm292_vm6 = vcmp.ge.f32.partialorder %v291_v25, 0.0  ;;  %v296_v26 = vsub.f32 %v291_v25, %v260_v24 }
  0xf4   : > { %v293_v28 = vsel %vm292_vm6, 1, %v618_v27 }
  0xf5   : > { %v297_v29 = vmul.f32 %v296_v26, %v296_v26  ;;  %295 = vst.msk [vmem:[%s257_s30] sm:$0xff] %vm294_vm5, %v293_v28 }
  0xf7   : > { %v298_v30 = vsel %vm294_vm5, %v297_v29, 0.0 }
  0xf8   : > { %299 = vadd.xlane.f32.xlu1 %v298_v30 }
 0x185   : > { %v300_v31 = vpop.xlane.xlu1 %299 }
 0x186   : > { %v301_v32 = vrot.slane %v300_v31, 4 }
 0x188   : > { %v302_v33 = vadd.f32 %v301_v32, %v300_v31 }
 0x18a   : > { %v303_v34 = vrot.slane %v302_v33, 2 }
 0x18c   : > { %v304_v35 = vadd.f32 %v303_v34, %v302_v33 }
 0x18e   : > { %v305_v36 = vrot.slane %v304_v35, 1 }
 0x190   : > { %v306_v37 = vadd.f32 %v305_v36, %v304_v35 }
 0x192   : > { %464 = vpush %v306_v37 }
 0x1c3   : > { %s465_s11 = spop %464 }
 0x1c4   : > { %v308_v38 = vstv %s465_s11 }
 0x1c5   : > { %309 = vst [vmem:[%s245_s5] sm:$0xff] %v308_v38 }
 0x1c6   : > { %562 = shalt.err (!%p559_p5)
}
 0x1c7   : > { %s563_s7 = scalar_lea.hbm %s784_s12, 128  ;;  %s567_s25 = scalar_lea.hbm %s830_s4, 256 }
 0x1c8   : > { %p564_p8 = scmp.ne.s32.totalorder %s784_s12, %s563_s7  ;;  %p568_p1 = scmp.lt.u32.totalorder %s784_s12, %s830_s4 }
 0x1c9   : > { %p569_p3 = scmp.lt.u32.totalorder %s567_s25, %s563_s7  ;;  %p571_p6 = scmp.lt.u32.totalorder %s563_s7, %s784_s12 }
 0x1ca   : > { %p565_p9 = pnand %p564_p8, %p839_p12 }
 0x1cb   : > { %p570_p11 = por %p569_p3, %p568_p1 }
 0x1cc   : > { %p566_p0 = pneg %p565_p9 }
 0x1cd   : > { %p572_p13 = por %p571_p6, %p570_p11 }
 0x1cf   : > { %p573_p7 = pnand %p572_p13, %p566_p0 }
 0x1d1   : > { %576 = shalt.err (!%p573_p7)
}
 0x1d2   : > { %468 = dma.vmem_to_hbm [thread:$0]  (%p839_p12), %s779_s6, 128, %s784_s12, %s315_s14  }
 0x1d3 PF: > { %s350_s5 = sand.u32 1, %s603_s15   ;;  %p840_p10 = scmp.ne.s32.totalorder %s835_s28, 0 }
 0x1d4   : > { %p841_p2 = scmp.ge.s32.totalorder %s615_s18, 2  ;;  %s351_s13 = scalar_lea.sflag [#allocation4], %s350_s5 }
 0x1d6   : > { %p475_p4 = pnand %p841_p2, %p840_p10 }
 0x1d8   : > { %598 = dma.done.wait (!%p475_p4), %s351_s13, 128  }
 0x1d9   : > { %600 = vsyncadd (!%p475_p4), %s351_s13, 4294967168  ;;  %p18_p5 = scmp.ge.s32.totalorder %s670_s21, 4   ;;  %s842_s15 = smov %s607_s16 }
 0x1da   : > { %s843_s16 = smov %s611_s17  ;;  %s844_s17 = smov %s682_s24 }
 0x1db   : > { %s845_s18 = smov %s670_s21  ;;  %20 = sbr.rel (!%p18_p5) target bundleno = 5 (0x5), region = 95 }
 0x1e2   :  { %356 = vsyncpa [#allocation3], 1 }
 0x1e3   :  { %358 = vsyncpa [#allocation3 + $0x1], 1 }
 0x1e4   :  { %359 = vsyncpa [#allocation4], 1 }
 0x1e5   :  { %361 = vsyncpa [#allocation4 + $0x1], 1 }

</bundles_post_ra>
